<compile_context>
chip_gen: v7x
topology: tpu7x:2x2x1
jax: 0.10.0
libtpu: 0.0.40
codegen_flags: <defaults>
</compile_context>

<pallas_src>
import jax
import jax.numpy as jnp
import numpy as np
from jax.experimental import pallas as pl
from jax.experimental.pallas import tpu as pltpu

NEG_SLOPE = 0.2
BN_EPS = 1e-5


def _leaky_relu(x):
    return jnp.where(x > 0, x, NEG_SLOPE * x)


def distance_net_kernel(x1_ref, x2_ref,
                        w1_ref, b1_ref,
                        w2_ref, b2_ref,
                        w3_ref, b3_ref,
                        wt_ref, wb_ref, bfc_ref,
                        out_ref):
    """One batch tile: stacked shared-weight towers + VPU head, lane-dense out."""
    tb = x1_ref.shape[0]
    cdt = w1_ref.dtype                            # MXU compute dtype (bf16)

    # Shared weights -> cast to the matmul dtype first (halves the concat copy
    # bytes vs f32) and stack the two inputs along M: one MXU matmul per layer.
    x = jnp.concatenate([x1_ref[...].astype(cdt), x2_ref[...].astype(cdt)],
                        axis=0)                                          # (2TB, 128)

    h = jnp.dot(x, w1_ref[...], preferred_element_type=jnp.float32)
    h = _leaky_relu(h + b1_ref[...]).astype(cdt)          # conv1 + bn1 + lrelu
    h = jnp.dot(h, w2_ref[...], preferred_element_type=jnp.float32)
    h = _leaky_relu(h + b2_ref[...]).astype(cdt)          # conv2 + bn2 + lrelu
    h = jnp.dot(h, w3_ref[...], preferred_element_type=jnp.float32)
    e = _leaky_relu(h + b3_ref[...])                      # conv3 + bn3 + lrelu, (2TB, E) f32

    # TODO(synk): nn.Dropout() is identity in eval mode; train-mode RNG mask omitted.

    # fc1 on concat([e1, e2], -1) with a (2E, 1) weight: do it on the VPU +
    # lane reduce instead of a degenerate N=1 MXU matmul.
    e1 = e[:tb]                                           # (TB, E)
    e2 = e[tb:]                                           # (TB, E)
    col = jnp.sum(e1 * wt_ref[...] + e2 * wb_ref[...], axis=-1, keepdims=True)  # (TB, 1)

    # Lane-dense output: one (1, TB) row, batch along lanes.
    out_ref[...] = (col + bfc_ref[...]).reshape(1, tb)


def distance_net_forward(input1, input2, kp, *, tile_b=1024):
    """input1, input2: (B, 128, 1) float32 (PyTorch NCW). Returns (B, 1) float32.

    tile_b may be raised (e.g. 2048) for very large B if VMEM allows; per-step
    pipeline overhead is ~0.35us, input DMA per tile ~tile_b*1KiB.
    """
    B, C, S = input1.shape
    assert S == 1, "DistanceNet.forward squeezes dim 2 -> sequence length must be 1"

    x1 = input1.reshape(B, C)
    x2 = input2.reshape(B, C)

    if B <= tile_b:
        TB = B                                 # single tile == full array (always legal)
    else:
        assert tile_b % 128 == 0, "tile_b must be a multiple of 128 when tiling"
        TB = tile_b
    ntiles = pl.cdiv(B, TB)                    # ragged last tile: Pallas clamps edge DMAs

    inp_spec = pl.BlockSpec((TB, C), lambda i: (i, 0))
    resident = lambda a: pl.BlockSpec(a.shape, lambda i: (0, 0))  # stays in VMEM

    weights = (kp["w1"], kp["b1"], kp["w2"], kp["b2"], kp["w3"], kp["b3"],
               kp["wt"], kp["wb"], kp["bfc"])

    H1 = kp["w1"].shape[1]
    H2 = kp["w2"].shape[1]
    E = kp["w3"].shape[1]
    Bp = ntiles * TB
    flops = 2 * (2 * Bp) * (C * H1 + H1 * H2 + H2 * E) + 4 * Bp * E
    bytes_accessed = (2 * B * C * 4 + B * 4
                      + sum(int(a.size) * a.dtype.itemsize for a in weights))

    out = pl.pallas_call(
        distance_net_kernel,
        out_shape=jax.ShapeDtypeStruct((1, B), jnp.float32),
        grid=(ntiles,),
        in_specs=[inp_spec, inp_spec] + [resident(a) for a in weights],
        out_specs=pl.BlockSpec((1, TB), lambda i: (0, i)),
        compiler_params=pltpu.CompilerParams(
            dimension_semantics=("parallel",)),
        cost_estimate=pl.CostEstimate(
            flops=int(flops), transcendentals=0,
            bytes_accessed=int(bytes_accessed)),
    )(x1, x2, *weights)

    return out.reshape(B, 1)


# ---------------- parameters (PyTorch layout) + folding for the kernel ----------------

def make_raw_params(key, emb_dims):
    """Deterministic PyTorch-layout parameters, incl. eval-mode BN running stats."""
    ks = jax.random.split(key, 8)

    def u(k, shape, s=0.1):
        return jax.random.uniform(k, shape, jnp.float32, -s, s)

    def bn(k, c):
        k1, k2, k3, k4 = jax.random.split(k, 4)
        return dict(gamma=1.0 + u(k1, (c,)), beta=u(k2, (c,)),
                    mean=u(k3, (c,)), var=0.5 + jnp.abs(u(k4, (c,))))

    return dict(
        w1=u(ks[0], (64, 128)),            # Conv1d(128, 64, k=1).weight[:, :, 0]
        w2=u(ks[1], (128, 64)),            # Conv1d(64, 128, k=1)
        w3=u(ks[2], (emb_dims, 128)),      # Conv1d(128, emb_dims, k=1)
        bn1=bn(ks[3], 64), bn2=bn(ks[4], 128), bn3=bn(ks[5], emb_dims),
        wfc=u(ks[6], (1, 2 * emb_dims)),   # Linear(2E, 1).weight
        bfc=u(ks[7], (1,)),                # Linear(2E, 1).bias
    )


def prepare_params(raw, compute_dtype=jnp.bfloat16):
    """Fold eval-mode BN scale into the conv weights, transpose for x @ W, and
    cast the matmul operands to the MXU compute dtype (bf16 on v5e/v6e/v7x;
    pass jnp.float32 for full-f32). Shifts / head weights stay f32 (VPU path)."""

    def fold(w, bn):
        scale = bn["gamma"] / jnp.sqrt(bn["var"] + BN_EPS)      # (C_out,)
        shift = bn["beta"] - bn["mean"] * scale                 # (C_out,)
        wf = (w * scale[:, None]).T.astype(compute_dtype)       # (C_in, C_out)
        return wf, shift[None, :].astype(jnp.float32)

    w1, b1 = fold(raw["w1"], raw["bn1"])
    w2, b2 = fold(raw["w2"], raw["bn2"])
    w3, b3 = fold(raw["w3"], raw["bn3"])
    E = raw["w3"].shape[0]
    return dict(
        w1=w1, b1=b1, w2=w2, b2=b2, w3=w3, b3=b3,
        wt=raw["wfc"][:, :E].astype(jnp.float32),   # (1, E) head row for tower 1
        wb=raw["wfc"][:, E:].astype(jnp.float32),   # (1, E) head row for tower 2
        bfc=raw["bfc"].reshape(1, 1).astype(jnp.float32),
    )


def reference_forward(input1, input2, raw):
    """Pure-JAX f32 mirror of the PyTorch eval-mode forward."""
    def bn(h, p):
        return (h - p["mean"]) / jnp.sqrt(p["var"] + BN_EPS) * p["gamma"] + p["beta"]

    def tower(x):
        h = _leaky_relu(bn(x @ raw["w1"].T, raw["bn1"]))
        h = _leaky_relu(bn(h @ raw["w2"].T, raw["bn2"]))
        h = _leaky_relu(bn(h @ raw["w3"].T, raw["bn3"]))
        return h

    x1 = input1[:, :, 0]
    x2 = input2[:, :, 0]
    feat = jnp.concatenate([tower(x1), tower(x2)], axis=1)
    return feat @ raw["wfc"].T + raw["bfc"]


if __name__ == "__main__":
    C_IN, SEQ, EMB = 128, 1, 32      # conv1 requires 128 input channels, seq len 1

    key = jax.random.PRNGKey(0)
    k1, k2, k3, k4, kpar = jax.random.split(key, 5)
    raw = make_raw_params(kpar, EMB)
    params = prepare_params(raw)

    # Small single-tile batch.
    B = 16
    in1 = jax.random.normal(k1, (B, C_IN, SEQ), jnp.float32)
    in2 = jax.random.normal(k2, (B, C_IN, SEQ), jnp.float32)
    out = jax.block_until_ready(distance_net_forward(in1, in2, params))
    ref = jax.block_until_ready(reference_forward(in1, in2, raw))
    assert out.shape == (B, 1)
    np.testing.assert_allclose(np.asarray(out), np.asarray(ref), rtol=5e-2, atol=2e-2)

    # Multi-tile (pipelined) path with a ragged last tile: B not a multiple of TB.
    B2 = 200
    in1b = jax.random.normal(k3, (B2, C_IN, SEQ), jnp.float32)
    in2b = jax.random.normal(k4, (B2, C_IN, SEQ), jnp.float32)
    out2 = jax.block_until_ready(distance_net_forward(in1b, in2b, params, tile_b=128))
    ref2 = jax.block_until_ready(reference_forward(in1b, in2b, raw))
    assert out2.shape == (B2, 1)
    np.testing.assert_allclose(np.asarray(out2), np.asarray(ref2), rtol=5e-2, atol=2e-2)

    print("KERNEL_OK")
</pallas_src>

<mosaic_0001>
module attributes {stable_mosaic.version = 11 : i64} {
  func.func @distance_net_kernel(%arg0: i32, %arg1: memref<16x128xf32, #tpu.memory_space<vmem>>, %arg2: memref<16x128xf32, #tpu.memory_space<vmem>>, %arg3: memref<128x64xbf16, #tpu.memory_space<vmem>>, %arg4: memref<1x64xf32, #tpu.memory_space<vmem>>, %arg5: memref<64x128xbf16, #tpu.memory_space<vmem>>, %arg6: memref<1x128xf32, #tpu.memory_space<vmem>>, %arg7: memref<128x32xbf16, #tpu.memory_space<vmem>>, %arg8: memref<1x32xf32, #tpu.memory_space<vmem>>, %arg9: memref<1x32xf32, #tpu.memory_space<vmem>>, %arg10: memref<1x32xf32, #tpu.memory_space<vmem>>, %arg11: memref<1x1xf32, #tpu.memory_space<vmem>>, %arg12: memref<1x16xf32, #tpu.memory_space<vmem>>) attributes {dimension_semantics = [#tpu.dimension_semantics<parallel>], iteration_bounds = array<i64: 1>, scalar_prefetch = 0 : i64, scratch_operands = 0 : i64, tpu.core_type = #tpu.core_type<tc>, window_params = [{transform_indices = @transform_0, window_bounds = array<i64: 16, 128>}, {transform_indices = @transform_1, window_bounds = array<i64: 16, 128>}, {pipeline_mode = #tpu.pipeline_mode<synchronous>, transform_indices = @transform_2, window_bounds = array<i64: 128, 64>}, {pipeline_mode = #tpu.pipeline_mode<synchronous>, transform_indices = @transform_3, window_bounds = array<i64: 1, 64>}, {pipeline_mode = #tpu.pipeline_mode<synchronous>, transform_indices = @transform_4, window_bounds = array<i64: 64, 128>}, {pipeline_mode = #tpu.pipeline_mode<synchronous>, transform_indices = @transform_5, window_bounds = array<i64: 1, 128>}, {pipeline_mode = #tpu.pipeline_mode<synchronous>, transform_indices = @transform_6, window_bounds = array<i64: 128, 32>}, {pipeline_mode = #tpu.pipeline_mode<synchronous>, transform_indices = @transform_7, window_bounds = array<i64: 1, 32>}, {pipeline_mode = #tpu.pipeline_mode<synchronous>, transform_indices = @transform_8, window_bounds = array<i64: 1, 32>}, {pipeline_mode = #tpu.pipeline_mode<synchronous>, transform_indices = @transform_9, window_bounds = array<i64: 1, 32>}, {pipeline_mode = #tpu.pipeline_mode<synchronous>, transform_indices = @transform_10, window_bounds = array<i64: 1, 1>}, {transform_indices = @transform_11, window_bounds = array<i64: 1, 16>}]} {
    %c0 = arith.constant 0 : index
    %c0_0 = arith.constant 0 : index
    %0 = vector.load %arg1[%c0, %c0_0] : memref<16x128xf32, #tpu.memory_space<vmem>>, vector<16x128xf32>
    %1 = arith.truncf %0 : vector<16x128xf32> to vector<16x128xbf16>
    %c0_1 = arith.constant 0 : index
    %c0_2 = arith.constant 0 : index
    %2 = vector.load %arg2[%c0_1, %c0_2] : memref<16x128xf32, #tpu.memory_space<vmem>>, vector<16x128xf32>
    %3 = arith.truncf %2 : vector<16x128xf32> to vector<16x128xbf16>
    %4 = tpu.concatenate %1, %3 in 0 : vector<16x128xbf16>, vector<16x128xbf16> -> vector<32x128xbf16>
    %c0_3 = arith.constant 0 : index
    %c0_4 = arith.constant 0 : index
    %5 = vector.load %arg3[%c0_3, %c0_4] : memref<128x64xbf16, #tpu.memory_space<vmem>>, vector<128x64xbf16>
    %cst = arith.constant dense<0.000000e+00> : vector<32x64xf32>
    %6 = tpu.matmul %4, %5, %cst {dimension_numbers = #tpu.dot_dimension_numbers<[1], [0], [0], [1], [0, 0, 1, 1], [], []>} : vector<32x128xbf16>, vector<128x64xbf16>, vector<32x64xf32> -> vector<32x64xf32>
    %c0_5 = arith.constant 0 : index
    %c0_6 = arith.constant 0 : index
    %7 = vector.load %arg4[%c0_5, %c0_6] : memref<1x64xf32, #tpu.memory_space<vmem>>, vector<1x64xf32>
    %8 = vector.broadcast %7 : vector<1x64xf32> to vector<32x64xf32>
    %9 = arith.addf %6, %8 : vector<32x64xf32>
    %cst_7 = arith.constant 0.000000e+00 : f32
    %10 = vector.broadcast %cst_7 : f32 to vector<32x64xf32>
    %11 = arith.cmpf ogt, %9, %10 : vector<32x64xf32>
    %cst_8 = arith.constant 2.000000e-01 : f32
    %12 = vector.broadcast %cst_8 : f32 to vector<32x64xf32>
    %13 = arith.mulf %12, %9 : vector<32x64xf32>
    %14 = arith.select %11, %9, %13 : vector<32x64xi1>, vector<32x64xf32>
    %15 = arith.truncf %14 : vector<32x64xf32> to vector<32x64xbf16>
    %c0_9 = arith.constant 0 : index
    %c0_10 = arith.constant 0 : index
    %16 = vector.load %arg5[%c0_9, %c0_10] : memref<64x128xbf16, #tpu.memory_space<vmem>>, vector<64x128xbf16>
    %cst_11 = arith.constant dense<0.000000e+00> : vector<32x128xf32>
    %17 = tpu.matmul %15, %16, %cst_11 {dimension_numbers = #tpu.dot_dimension_numbers<[1], [0], [0], [1], [0, 0, 1, 1], [], []>} : vector<32x64xbf16>, vector<64x128xbf16>, vector<32x128xf32> -> vector<32x128xf32>
    %c0_12 = arith.constant 0 : index
    %c0_13 = arith.constant 0 : index
    %18 = vector.load %arg6[%c0_12, %c0_13] : memref<1x128xf32, #tpu.memory_space<vmem>>, vector<1x128xf32>
    %19 = vector.broadcast %18 : vector<1x128xf32> to vector<32x128xf32>
    %20 = arith.addf %17, %19 : vector<32x128xf32>
    %cst_14 = arith.constant 0.000000e+00 : f32
    %21 = vector.broadcast %cst_14 : f32 to vector<32x128xf32>
    %22 = arith.cmpf ogt, %20, %21 : vector<32x128xf32>
    %cst_15 = arith.constant 2.000000e-01 : f32
    %23 = vector.broadcast %cst_15 : f32 to vector<32x128xf32>
    %24 = arith.mulf %23, %20 : vector<32x128xf32>
    %25 = arith.select %22, %20, %24 : vector<32x128xi1>, vector<32x128xf32>
    %26 = arith.truncf %25 : vector<32x128xf32> to vector<32x128xbf16>
    %c0_16 = arith.constant 0 : index
    %c0_17 = arith.constant 0 : index
    %27 = vector.load %arg7[%c0_16, %c0_17] : memref<128x32xbf16, #tpu.memory_space<vmem>>, vector<128x32xbf16>
    %cst_18 = arith.constant dense<0.000000e+00> : vector<32x32xf32>
    %28 = tpu.matmul %26, %27, %cst_18 {dimension_numbers = #tpu.dot_dimension_numbers<[1], [0], [0], [1], [0, 0, 1, 1], [], []>} : vector<32x128xbf16>, vector<128x32xbf16>, vector<32x32xf32> -> vector<32x32xf32>
    %c0_19 = arith.constant 0 : index
    %c0_20 = arith.constant 0 : index
    %29 = vector.load %arg8[%c0_19, %c0_20] : memref<1x32xf32, #tpu.memory_space<vmem>>, vector<1x32xf32>
    %30 = vector.broadcast %29 : vector<1x32xf32> to vector<32x32xf32>
    %31 = arith.addf %28, %30 : vector<32x32xf32>
    %cst_21 = arith.constant 0.000000e+00 : f32
    %32 = vector.broadcast %cst_21 : f32 to vector<32x32xf32>
    %33 = arith.cmpf ogt, %31, %32 : vector<32x32xf32>
    %cst_22 = arith.constant 2.000000e-01 : f32
    %34 = vector.broadcast %cst_22 : f32 to vector<32x32xf32>
    %35 = arith.mulf %34, %31 : vector<32x32xf32>
    %36 = arith.select %33, %31, %35 : vector<32x32xi1>, vector<32x32xf32>
    %37 = vector.extract_strided_slice %36 {offsets = [0, 0], sizes = [16, 32], strides = [1, 1]} : vector<32x32xf32> to vector<16x32xf32>
    %38 = vector.extract_strided_slice %36 {offsets = [16, 0], sizes = [16, 32], strides = [1, 1]} : vector<32x32xf32> to vector<16x32xf32>
    %c0_23 = arith.constant 0 : index
    %c0_24 = arith.constant 0 : index
    %39 = vector.load %arg9[%c0_23, %c0_24] : memref<1x32xf32, #tpu.memory_space<vmem>>, vector<1x32xf32>
    %40 = vector.broadcast %39 : vector<1x32xf32> to vector<16x32xf32>
    %41 = arith.mulf %37, %40 : vector<16x32xf32>
    %c0_25 = arith.constant 0 : index
    %c0_26 = arith.constant 0 : index
    %42 = vector.load %arg10[%c0_25, %c0_26] : memref<1x32xf32, #tpu.memory_space<vmem>>, vector<1x32xf32>
    %43 = vector.broadcast %42 : vector<1x32xf32> to vector<16x32xf32>
    %44 = arith.mulf %38, %43 : vector<16x32xf32>
    %45 = arith.addf %41, %44 : vector<16x32xf32>
    %cst_27 = arith.constant dense<0.000000e+00> : vector<16xf32>
    %46 = vector.multi_reduction <add>, %45, %cst_27 [1] : vector<16x32xf32> to vector<16xf32>
    %47 = vector.shape_cast %46 : vector<16xf32> to vector<16x1xf32>
    %c0_28 = arith.constant 0 : index
    %c0_29 = arith.constant 0 : index
    %48 = vector.load %arg11[%c0_28, %c0_29] : memref<1x1xf32, #tpu.memory_space<vmem>>, vector<1x1xf32>
    %49 = vector.broadcast %48 : vector<1x1xf32> to vector<16x1xf32>
    %50 = arith.addf %47, %49 : vector<16x1xf32>
    %51 = vector.shape_cast %50 : vector<16x1xf32> to vector<1x16xf32>
    %c0_30 = arith.constant 0 : index
    %c0_31 = arith.constant 0 : index
    %52 = vector.load %arg12[%c0_30, %c0_31] : memref<1x16xf32, #tpu.memory_space<vmem>>, vector<1x16xf32>
    tpu.vector_store %arg12[%c0_30, %c0_31], %51 {strides = array<i32>} : memref<1x16xf32, #tpu.memory_space<vmem>>, vector<1x16xf32>,
    return
  }
  func.func @transform_0(%arg0: i32) -> (i32, i32) {
    %c0_i32 = arith.constant 0 : i32
    %c0_i32_0 = arith.constant 0 : i32
    return %arg0, %c0_i32 : i32, i32
  }
  func.func @transform_1(%arg0: i32) -> (i32, i32) {
    %c0_i32 = arith.constant 0 : i32
    %c0_i32_0 = arith.constant 0 : i32
    return %arg0, %c0_i32 : i32, i32
  }
  func.func @transform_2(%arg0: i32) -> (i32, i32) {
    %c0_i32 = arith.constant 0 : i32
    %c0_i32_0 = arith.constant 0 : i32
    %c0_i32_1 = arith.constant 0 : i32
    return %c0_i32, %c0_i32_0 : i32, i32
  }
  func.func @transform_3(%arg0: i32) -> (i32, i32) {
    %c0_i32 = arith.constant 0 : i32
    %c0_i32_0 = arith.constant 0 : i32
    %c0_i32_1 = arith.constant 0 : i32
    return %c0_i32, %c0_i32_0 : i32, i32
  }
  func.func @transform_4(%arg0: i32) -> (i32, i32) {
    %c0_i32 = arith.constant 0 : i32
    %c0_i32_0 = arith.constant 0 : i32
    %c0_i32_1 = arith.constant 0 : i32
    return %c0_i32, %c0_i32_0 : i32, i32
  }
  func.func @transform_5(%arg0: i32) -> (i32, i32) {
    %c0_i32 = arith.constant 0 : i32
    %c0_i32_0 = arith.constant 0 : i32
    %c0_i32_1 = arith.constant 0 : i32
    return %c0_i32, %c0_i32_0 : i32, i32
  }
  func.func @transform_6(%arg0: i32) -> (i32, i32) {
    %c0_i32 = arith.constant 0 : i32
    %c0_i32_0 = arith.constant 0 : i32
    %c0_i32_1 = arith.constant 0 : i32
    return %c0_i32, %c0_i32_0 : i32, i32
  }
  func.func @transform_7(%arg0: i32) -> (i32, i32) {
    %c0_i32 = arith.constant 0 : i32
    %c0_i32_0 = arith.constant 0 : i32
    %c0_i32_1 = arith.constant 0 : i32
    return %c0_i32, %c0_i32_0 : i32, i32
  }
  func.func @transform_8(%arg0: i32) -> (i32, i32) {
    %c0_i32 = arith.constant 0 : i32
    %c0_i32_0 = arith.constant 0 : i32
    %c0_i32_1 = arith.constant 0 : i32
    return %c0_i32, %c0_i32_0 : i32, i32
  }
  func.func @transform_9(%arg0: i32) -> (i32, i32) {
    %c0_i32 = arith.constant 0 : i32
    %c0_i32_0 = arith.constant 0 : i32
    %c0_i32_1 = arith.constant 0 : i32
    return %c0_i32, %c0_i32_0 : i32, i32
  }
  func.func @transform_10(%arg0: i32) -> (i32, i32) {
    %c0_i32 = arith.constant 0 : i32
    %c0_i32_0 = arith.constant 0 : i32
    %c0_i32_1 = arith.constant 0 : i32
    return %c0_i32, %c0_i32_0 : i32, i32
  }
  func.func @transform_11(%arg0: i32) -> (i32, i32) {
    %c0_i32 = arith.constant 0 : i32
    %c0_i32_0 = arith.constant 0 : i32
    return %c0_i32, %arg0 : i32, i32
  }
}

</mosaic_0001>

<bundles_post_ra>
// kernel: tpu_custom_call.1
= control target key start
LH: loop header
LB: loop body
LE: loop exit
PB: predicated region body
PF: predicated region fallthrough
CT: control target
= control target key end

     0   :  { %s815_s0 = inlined_call_operand.vmem [shape: f32[16,128], index: 0, kind: input, shape index: {}]   ;;  %s816_s1 = inlined_call_operand.vmem [shape: f32[16,128], index: 1, kind: input, shape index: {}]   ;;  %s817_s2 = inlined_call_operand.vmem [shape: bf16[128,64], index: 2, kind: input, shape index: {}]   ;;  %s818_s3 = inlined_call_operand.vmem [shape: f32[1,64], index: 3, kind: input, shape index: {}]   ;;  %s819_s4 = inlined_call_operand.vmem [shape: bf16[64,128], index: 4, kind: input, shape index: {}]   ;;  %s820_s5 = inlined_call_operand.vmem [shape: f32[1,128], index: 5, kind: input, shape index: {}]   ;;  %s821_s6 = inlined_call_operand.vmem [shape: bf16[128,32], index: 6, kind: input, shape index: {}]   ;;  %s822_s7 = inlined_call_operand.vmem [shape: f32[1,32], index: 7, kind: input, shape index: {}]   ;;  %s823_s8 = inlined_call_operand.vmem [shape: f32[1,32], index: 8, kind: input, shape index: {}]   ;;  %s824_s9 = inlined_call_operand.vmem [shape: f32[1,32], index: 9, kind: input, shape index: {}]   ;;  %s825_s10 = inlined_call_operand.<no memory space> [shape: f32[1,1], index: 10, kind: input, shape index: {}]   ;;  %s826_s11 = inlined_call_operand.hbm [shape: f32[1,16], index: 11, kind: output, shape index: {}]  }
   0x1   :  { %v16_v0 = vstv %s825_s10 }
   0x2   :  { %17 = vst [vmem:[#allocation2] sm:$0x1] %v16_v0 }
   0x3   :  { %v607_v1 = vld [vmem:[%s817_s2] sm:$0xff]   ;;  %v608_v2 = vld [vmem:[%s817_s2 + $0x8] sm:$0xff]   ;;  %v609_v3 = vld [vmem:[%s817_s2 + $0x10] sm:$0xff]  }
   0x4   :  { %551 = vmatprep.subr.bf16.mxu0 %v607_v1  ;;  %v610_v4 = vld [vmem:[%s817_s2 + $0x18] sm:$0xff]   ;;  %v42_v5 = vld [vmem:[%s815_s0] sm:$0xff]  ;;  %v43_v6 = vld [vmem:[%s815_s0 + $0x8] sm:$0xff] }
   0x5   :  { %552 = vmatpush3.bf16.msra.mxu0 %v607_v1  ;;  %v44_v7 = vpack.c.bf16 %v43_v6, %v42_v5  ;;  %v611_v8 = vld [vmem:[%s817_s2 + $0x20] sm:$0xff]   ;;  %v612_v10 = vld [vmem:[%s817_s2 + $0x28] sm:$0xff]  }
   0x6   :  { %553 = vmatprep.subr.bf16.mxu0 %v608_v2  ;;  %v615_v9 = vld [vmem:[%s819_s4] sm:$0xff]  }
   0x7   :  { %567 = vmatprep.mubr.bf16.mxu0 %v44_v7  ;;  %571 = vmatprep.subr.bf16.mxu1 %v615_v9 }
   0x8   :  { %572 = vmatpush3.bf16.msra.mxu1 %v615_v9 }
   0x9   :  { %554 = vmatpush3.bf16.msra.mxu0 %v608_v2 }
   0xa   :  { %555 = vmatprep.subr.bf16.mxu0 %v609_v3 }
   0xd   :  { %556 = vmatpush3.bf16.msra.mxu0 %v609_v3 }
   0xe   :  { %557 = vmatprep.subr.bf16.mxu0 %v610_v4 }
  0x11   :  { %558 = vmatpush3.bf16.msra.mxu0 %v610_v4 }
  0x12   :  { %559 = vmatprep.subr.bf16.mxu0 %v611_v8 }
  0x13   :  { %18 = vsyncpa [#allocation4], 0  ;;  %v613_v11 = vld [vmem:[%s817_s2 + $0x30] sm:$0xff]   ;;  %v614_v12 = vld [vmem:[%s817_s2 + $0x38] sm:$0xff]   ;;  %vm221_vm4 = vcmask 523264   ;;  %vm443_vm13 = vcmask 261120  }
  0x14   :  { %v45_v13 = vld [vmem:[%s816_s1] sm:$0xff]  ;;  %v46_v14 = vld [vmem:[%s816_s1 + $0x8] sm:$0xff]  ;;  %v617_v17 = vld [vmem:[%s819_s4 + $0x10] sm:$0xff]   ;;  %vm478_vm14 = vcmask 130112   ;;  %vm481_vm15 = vcmask 122880  }
  0x15   :  { %560 = vmatpush3.bf16.msra.mxu0 %v611_v8  ;;  %v47_v15 = vpack.c.bf16 %v46_v14, %v45_v13  ;;  %v616_v16 = vld [vmem:[%s819_s4 + $0x8] sm:$0xff]   ;;  %v618_v18 = vld [vmem:[%s819_s4 + $0x18] sm:$0xff]   ;;  %v619_v19 = vld [vmem:[%s821_s6] sm:$0xff]  }
  0x16   :  { %561 = vmatprep.subr.bf16.mxu0 %v612_v10  ;;  %573 = vmatprep.subr.bf16.mxu1 %v616_v16  ;;  %v497_v20 = vld [vmem:[%s818_s3] ss:$0 sm:$0xff]  ;;  %v620_v39 = vld [vmem:[%s821_s6 + $0x8] sm:$0xff]   ;;  %v621_v40 = vld [vmem:[%s821_s6 + $0x10] sm:$0xff]  }
  0x17   :  { %574 = vmatpush3.bf16.msra.mxu1 %v616_v16  ;;  %v622_v41 = vld [vmem:[%s821_s6 + $0x18] sm:$0xff]   ;;  %v623_v42 = vld [vmem:[%s821_s6 + $0x20] sm:$0xff]   ;;  %v624_v43 = vld [vmem:[%s821_s6 + $0x28] sm:$0xff]  }
  0x18   :  { %575 = vmatprep.subr.bf16.mxu1 %v617_v17  ;;  %v625_v44 = vld [vmem:[%s821_s6 + $0x30] sm:$0xff]   ;;  %v626_v45 = vld [vmem:[%s821_s6 + $0x38] sm:$0xff]   ;;  %v506_v46 = vld [vmem:[%s820_s5] ss:$0 sm:$0xff] }
  0x19   :  { %562 = vmatpush3.bf16.msra.mxu0 %v612_v10  ;;  %v513_v1 = vld [vmem:[%s822_s7] ss:$0 sm:$0xff]  ;;  %s652_s7 = smov [#allocation3]  }
  0x1a   :  { %563 = vmatprep.subr.bf16.mxu0 %v613_v11  ;;  %v523_v10 = vld [vmem:[%s824_s9] ss:$0 sm:$0xff] }
  0x1b   :  { %576 = vmatpush3.bf16.msra.mxu1 %v617_v17  ;;  %v522_v13 = vld [vmem:[%s823_s8] ss:$0 sm:$0xff]  ;;  %s489_s8 = sshll.u32 %s652_s7, 4  ;;  %s490_s8 = int_to_ptr.vmem [resolvable:$true] %s489_s8 }
  0x1c   :  { %577 = vmatprep.subr.bf16.mxu1 %v618_v18  ;;  %s627_s9 = scalar_lea.vmem %s490_s8, 16  ;;  %s631_s27 = scalar_lea.vmem %s490_s8, 32 }
  0x1d   :  { %564 = vmatpush3.bf16.msra.mxu0 %v613_v11  ;;  %p628_p0 = scmp.ne.s32.totalorder %s490_s8, %s627_s9  ;;  %p632_p1 = scmp.lt.s32.totalorder %s490_s8, %s490_s8 }
  0x1e   :  { %565 = vmatprep.subr.bf16.mxu0 %v614_v12  ;;  %p633_p2 = scmp.lt.s32.totalorder %s631_s27, %s627_s9 }
  0x1f   :  { %578 = vmatpush3.bf16.msra.mxu1 %v618_v18 }
  0x20   :  { %583 = vmatprep.subr.bf16.mxu1 %v619_v19  ;;  %p634_p3 = por %p633_p2, %p632_p1 }
  0x21   :  { %566 = vmatpush3.bf16.msra.mxu0 %v614_v12 }
  0x22   :  { %p635_p4 = pnand %p634_p3, %p628_p0 }
  0x24   :  { %568 = vmatmul.mubr.bf16.vlgmr.msra.gmra.mrb[0].mxu0 %v47_v15 }
  0xf7   :  { %v569_v21 = vpop.f32.mrb[0].mxu0 }
  0xf8   :  { %v162_v22 = vadd.f32 %v569_v21, %v497_v20  ;;  %v153_v23 = vpop.f32.mrb[1].mxu0 }
  0xf9   :  { %v154_v24 = vadd.f32 %v497_v20, %v153_v23  ;;  %v570_v25 = vpop.f32.mrb[2].mxu0 }
  0xfa   :  { %v174_v26 = vmul.f32 0.2, %v162_v22  ;;  %v165_v27 = vadd.f32 %v570_v25, %v497_v20  ;;  %v156_v28 = vpop.f32.mrb[3].mxu0  ;;  %vm170_vm0 = vcmp.gt.f32.partialorder %v162_v22, 0.0 }
  0xfb   :  { %v172_v29 = vmul.f32 0.2, %v154_v24  ;;  %v157_v30 = vadd.f32 %v497_v20, %v156_v28  ;;  %vm168_vm2 = vcmp.gt.f32.partialorder %v154_v24, 0.0  ;;  %v651_v28 = vmov 0  }
  0xfc   :  { %vm171_vm1 = vcmp.gt.f32.partialorder %v165_v27, 0.0  ;;  %v175_v31 = vmul.f32 0.2, %v165_v27  ;;  %v178_v33 = vsel %vm170_vm0, %v162_v22, %v174_v26  ;;  %605 = vset.pattern.permute.xlu1 %v651_v28  ;;  %606 = vset.pattern.permute.xlu0 %v651_v28 }
  0xfd   :  { %v173_v32 = vmul.f32 0.2, %v157_v30  ;;  %vm169_vm3 = vcmp.gt.f32.partialorder %v157_v30, 0.0  ;;  %v176_v36 = vsel %vm168_vm2, %v154_v24, %v172_v29  ;;  %v524_v29 = vld [vmem:[#allocation2] ss:$0 sm:$0xff] }
  0xfe   :  { %v179_v34 = vsel %vm171_vm1, %v165_v27, %v175_v31 }
  0xff   :  { %v181_v35 = vpack.c.bf16 %v179_v34, %v178_v33  ;;  %v177_v37 = vsel %vm169_vm3, %v157_v30, %v173_v32  ;;  %v467_v34 = vlaneseq }
 0x100   :  { %v180_v38 = vpack.c.bf16 %v177_v37, %v176_v36 }
 0x101   :  { %v470_v36 = vshrl.u32 %v467_v34, 7 }
 0x102   :  { %579 = vmatprep.mubr.msk.bf16.mxu1 %vm221_vm4, %v180_v38 }
 0x103   :  { %580 = vmatmul.mubr.msk.bf16.vlgmr.msra.gmra.mrb[0].mxu1 %vm221_vm4, %v181_v35  ;;  %v468_v35 = vand.u32 127, %v467_v34 }
 0x104   :  { %584 = vmatpush3.bf16.msra.mxu1 %v619_v19 }
 0x105   :  { %585 = vmatprep.subr.bf16.mxu1 %v620_v39  ;;  %v473_v37 = vadd.s32 4294967288, %v468_v35 }
 0x108   :  { %586 = vmatpush3.bf16.msra.mxu1 %v620_v39  ;;  %v471_v39 = vsub.s32 %v468_v35, %v470_v36 }
 0x109   :  { %587 = vmatprep.subr.bf16.mxu1 %v621_v40 }
 0x10c   :  { %588 = vmatpush3.bf16.msra.mxu1 %v621_v40  ;;  %v476_v40 = vsub.s32 %v473_v37, %v470_v36 }
 0x10d   :  { %589 = vmatprep.subr.bf16.mxu1 %v622_v41 }
 0x110   :  { %590 = vmatpush3.bf16.msra.mxu1 %v622_v41 }
 0x111   :  { %591 = vmatprep.subr.bf16.mxu1 %v623_v42 }
 0x114   :  { %592 = vmatpush3.bf16.msra.mxu1 %v623_v42 }
 0x115   :  { %593 = vmatprep.subr.bf16.mxu1 %v624_v43 }
 0x118   :  { %594 = vmatpush3.bf16.msra.mxu1 %v624_v43 }
 0x119   :  { %595 = vmatprep.subr.bf16.mxu1 %v625_v44 }
 0x11c   :  { %596 = vmatpush3.bf16.msra.mxu1 %v625_v44 }
 0x11d   :  { %597 = vmatprep.subr.bf16.mxu1 %v626_v45 }
 0x120   :  { %598 = vmatpush3.bf16.msra.mxu1 %v626_v45 }
 0x1d6   :  { %v581_v47 = vpop.f32.mrb[0].mxu1 }
 0x1d7   :  { %v271_v48 = vadd.f32 %v581_v47, %v506_v46  ;;  %v262_v49 = vpop.f32.mrb[1].mxu1 }
 0x1d8   :  { %v263_v50 = vadd.f32 %v506_v46, %v262_v49  ;;  %v582_v51 = vpop.f32.mrb[2].mxu1 }
 0x1d9   :  { %v283_v52 = vmul.f32 0.2, %v271_v48  ;;  %v274_v53 = vadd.f32 %v582_v51, %v506_v46  ;;  %v265_v54 = vpop.f32.mrb[3].mxu1  ;;  %vm279_vm5 = vcmp.gt.f32.partialorder %v271_v48, 0.0 }
 0x1da   :  { %v281_v55 = vmul.f32 0.2, %v263_v50  ;;  %v266_v56 = vadd.f32 %v506_v46, %v265_v54  ;;  %vm277_vm6 = vcmp.gt.f32.partialorder %v263_v50, 0.0 }
 0x1db   :  { %vm280_vm7 = vcmp.gt.f32.partialorder %v274_v53, 0.0  ;;  %v284_v57 = vmul.f32 0.2, %v274_v53  ;;  %v287_v59 = vsel %vm279_vm5, %v271_v48, %v283_v52 }
 0x1dc   :  { %vm278_vm8 = vcmp.gt.f32.partialorder %v266_v56, 0.0  ;;  %v282_v58 = vmul.f32 0.2, %v266_v56  ;;  %v285_v62 = vsel %vm277_vm6, %v263_v50, %v281_v55 }
 0x1dd   :  { %v288_v60 = vsel %vm280_vm7, %v274_v53, %v284_v57 }
 0x1de   :  { %v290_v61 = vpack.c.bf16 %v288_v60, %v287_v59  ;;  %v286_v63 = vsel %vm278_vm8, %v266_v56, %v282_v58 }
 0x1df   :  { %v289_v0 = vpack.c.bf16 %v286_v63, %v285_v62 }
 0x1e1   :  { %599 = vmatprep.mubr.bf16.mxu1 %v289_v0 }
 0x1e2   :  { %600 = vmatmul.mubr.bf16.vlgmr.msra.gmra.mrb[4].mxu1 %v290_v61 }
 0x2b5   :  { %v601_v2 = vpop.f32.mrb[4].mxu1 }
 0x2b6   :  { %v405_v3 = vadd.f32 %v601_v2, %v513_v1  ;;  %v396_v4 = vpop.f32.mrb[5].mxu1 }
 0x2b7   :  { %v397_v5 = vadd.f32 %v513_v1, %v396_v4  ;;  %v602_v6 = vpop.f32.mrb[6].mxu1 }
 0x2b8   :  { %vm413_vm9 = vcmp.gt.f32.partialorder %v405_v3, 0.0  ;;  %v417_v7 = vmul.f32 0.2, %v405_v3  ;;  %v408_v8 = vadd.f32 %v602_v6, %v513_v1  ;;  %v399_v9 = vpop.f32.mrb[7].mxu1 }
 0x2b9   :  { %vm411_vm10 = vcmp.gt.f32.partialorder %v397_v5, 0.0  ;;  %v415_v11 = vmul.f32 0.2, %v397_v5  ;;  %v400_v12 = vadd.f32 %v513_v1, %v399_v9 }
 0x2ba   :  { %vm414_vm11 = vcmp.gt.f32.partialorder %v408_v8, 0.0  ;;  %v418_v14 = vmul.f32 0.2, %v408_v8  ;;  %v421_v15 = vsel %vm413_vm9, %v405_v3, %v417_v7 }
 0x2bb   :  { %vm412_vm12 = vcmp.gt.f32.partialorder %v400_v12, 0.0  ;;  %v416_v16 = vmul.f32 0.2, %v400_v12  ;;  %v419_v17 = vsel %vm411_vm10, %v397_v5, %v415_v11  ;;  %v439_v18 = vmul.f32 %v523_v10, %v421_v15 }
 0x2bc   :  { %v422_v19 = vsel %vm414_vm11, %v408_v8, %v418_v14  ;;  %v430_v20 = vmul.f32 %v522_v13, %v419_v17 }
 0x2bd   :  { %v420_v21 = vsel %vm412_vm12, %v400_v12, %v416_v16  ;;  %v440_v22 = vmul.f32 %v523_v10, %v422_v19 }
 0x2be   :  { %v441_v23 = vadd.f32 %v439_v18, %v430_v20  ;;  %v431_v24 = vmul.f32 %v522_v13, %v420_v21 }
 0x2c0   :  { %v444_v25 = vsel %vm443_vm13, %v441_v23, 0.0  ;;  %v442_v26 = vadd.f32 %v440_v22, %v431_v24 }
 0x2c1   :  { %445 = vadd.xlane.f32.xlu0 %v444_v25 }
 0x2c2   :  { %v447_v27 = vsel %vm443_vm13, %v442_v26, 0.0 }
 0x2c5   :  { %448 = vadd.xlane.f32.xlu0 %v447_v27 }
 0x34e   :  { %v446_v30 = vpop.xlane.xlu0 %445 }
 0x34f   :  { %v457_v31 = vadd.f32 %v524_v29, %v446_v30 }
 0x351   :  { %462 = vperm.xlu1 %605, %v457_v31  }
 0x352   :  { %v449_v32 = vpop.xlane.xlu0 %448 }
 0x353   :  { %v458_v33 = vadd.f32 %v524_v29, %v449_v32 }
 0x355   :  { %465 = vperm.xlu1 %605, %v458_v33  }
 0x3d0   :  { %v463_v38 = vpop.permute.xlu1 %462 }
 0x3d1   :  { %v472_v42 = vrot.slane %v463_v38, %v471_v39 }
 0x3d4   :  { %v466_v41 = vpop.permute.xlu1 %465 }
 0x3d5   :  { %v477_v43 = vrot.slane %v466_v41, %v476_v40 }
 0x3d7   :  { %v479_v44 = vsel %vm478_vm14, %v477_v43, %v472_v42 }
 0x3d8   :  { %482 = vst.msk [vmem:[#allocation3] sm:$0x1] %vm481_vm15, %v479_v44 }
 0x3d9   :  { %638 = shalt.err (!%p635_p4)
}
 0x3da   :  { %s639_s29 = scalar_lea.hbm %s826_s11, 16 }
 0x3db   :  { %p640_p5 = scmp.ne.s32.totalorder %s826_s11, %s639_s29  ;;  %p643_p6 = scmp.lt.u32.totalorder %s639_s29, %s826_s11 }
 0x3dd   :  { %p645_p7 = pnand %p643_p6, %p640_p5 }
 0x3df   :  { %648 = shalt.err (!%p645_p7)
}
 0x3e0   :  { %492 = dma.vmem_to_hbm [thread:$0]  %s490_s8, 16, %s826_s11, [#allocation4]  }
 0x3e1   :  { %649 = dma.done.wait [#allocation4], 16  }
 0x3e2   :  { %650 = vsyncadd [#allocation4], 4294967280 }
 0x3e3   :  { %496 = vsyncpa [#allocation4], 1 }

</bundles_post_ra>
